<compile_context>
chip_gen: v7x
topology: tpu7x:2x2x1
jax: 0.10.0
libtpu: 0.0.40
codegen_flags: <defaults>
</compile_context>

<pallas_src>
import jax
import jax.numpy as jnp
from jax.experimental import pallas as pl
from jax.experimental.pallas import tpu as pltpu

H = 32   # hidden_size
L = 20   # max_length


def attn_decoder_gru_kernel(xh_ref, enc_ref, w1_ref, wca_ref, wih_ref, whh_ref,
                            wout_ref, b_ref, out_ref):
    xh = xh_ref[...]                 # (1, 2H) = [dropout(x) | h]  (dropout = identity, eval)
    h = xh[:, H:]                    # (1, H)

    # Fused linear: one MXU push computes the attention logits AND the x-half
    # of attn_combine.  w1 = [[Wa_x^T | Wc_x^T], [Wa_h^T | 0]]  -> (2H, 2H)
    big = jnp.dot(xh, w1_ref[...], preferred_element_type=jnp.float32)   # (1, 2H)
    logits = big[:, :L] + b_ref[0:1, :L]        # (1, L)
    comb_x = big[:, H:]                         # (1, H) = x @ Wc_x^T

    # softmax(logits)
    m = jnp.max(logits, axis=-1, keepdims=True)
    e = jnp.exp(logits - m)
    attn_w = e / jnp.sum(e, axis=-1, keepdims=True)

    # attn_applied = attn_w @ encoder_outputs    (1,L)@(L,H) -> (1,H)
    attn_applied = jnp.dot(attn_w, enc_ref[...], preferred_element_type=jnp.float32)

    # attn_combine(cat(x, attn_applied)) then ReLU
    g = jnp.maximum(
        comb_x
        + jnp.dot(attn_applied, wca_ref[...], preferred_element_type=jnp.float32)
        + b_ref[1:2, :H],
        0.0)

    # Single-step GRU cell: gates fused into two (1,3H) matmuls (order r,z,n).
    # Row 2 of the bias block is [b_ir+b_hr | b_iz+b_hz | b_in];
    # row 3 is [0 | 0 | b_hn] so b_hn stays inside the r*(...) term.
    gi = jnp.dot(g, wih_ref[...], preferred_element_type=jnp.float32) + b_ref[2:3, :]
    gh = jnp.dot(h, whh_ref[...], preferred_element_type=jnp.float32) + b_ref[3:4, :]
    r = jax.nn.sigmoid(gi[:, :H] + gh[:, :H])
    z = jax.nn.sigmoid(gi[:, H:2 * H] + gh[:, H:2 * H])
    n = jnp.tanh(gi[:, 2 * H:] + r * gh[:, 2 * H:])
    h_new = (1.0 - z) * n + z * h

    out = (jnp.dot(h_new, wout_ref[...], preferred_element_type=jnp.float32)
           + b_ref[4:5, :H])

    # Single packed output slab (one writeback DMA):
    #   row 0: out,  row 1: new hidden,  row 2 (first L lanes): attn weights
    out_ref[0:1, :] = out
    out_ref[1:2, :] = h_new
    out_ref[2:3, :L] = attn_w


def init_params(key):
    """Deterministic PyTorch-style uniform init (U(-1/sqrt(fan_in), +))."""
    ks = jax.random.split(key, 10)

    def uni(k, shape, fan_in):
        b = 1.0 / jnp.sqrt(jnp.asarray(fan_in, jnp.float32))
        return jax.random.uniform(k, shape, jnp.float32, -b, b)

    return dict(
        W_attn=uni(ks[0], (L, 2 * H), 2 * H),  b_attn=uni(ks[1], (L,), 2 * H),
        W_comb=uni(ks[2], (H, 2 * H), 2 * H),  b_comb=uni(ks[3], (H,), 2 * H),
        W_ih=uni(ks[4], (3 * H, H), H),        b_ih=uni(ks[5], (3 * H,), H),
        W_hh=uni(ks[6], (3 * H, H), H),        b_hh=uni(ks[7], (3 * H,), H),
        W_out=uni(ks[8], (H, H), H),           b_out=uni(ks[9], (H,), H),
    )


def _prep(p):
    """Transpose / pack PyTorch-layout weights for right-multiplication."""
    Wa, Wc = p["W_attn"], p["W_comb"]                 # (L,2H), (H,2H)

    # Packed [attention | combine-x] matrix (2H, 2H).
    W1 = jnp.zeros((2 * H, 2 * H), jnp.float32)
    W1 = W1.at[:, :L].set(Wa.T)                       # logits block (both x and h rows)
    W1 = W1.at[:H, H:].set(Wc[:, :H].T)               # combine-x block (h rows stay 0)

    Wca = Wc[:, H:].T                                 # (H, H)  attn_applied part of combine
    Wih = p["W_ih"].T                                 # (H, 3H) gates r,z,n on lane blocks
    Whh = p["W_hh"].T                                 # (H, 3H)
    Wout = p["W_out"].T                               # (H, H)

    # Packed bias block (8, 3H); biases pre-folded where mathematically safe.
    B = jnp.zeros((8, 3 * H), jnp.float32)
    B = B.at[0, :L].set(p["b_attn"])
    B = B.at[1, :H].set(p["b_comb"])
    B = B.at[2, :].set(p["b_ih"].at[:2 * H].add(p["b_hh"][:2 * H]))   # b_r, b_z folded; b_in
    B = B.at[3, 2 * H:].set(p["b_hh"][2 * H:])                        # b_hn (inside r*(...))
    B = B.at[4, :H].set(p["b_out"])
    return [W1, Wca, Wih, Whh, Wout, B]


def attn_decoder_gru(inp, hidden, encoder_outputs, params):
    x = inp.reshape(1, H).astype(jnp.float32)     # dropout(p=0.1) is identity in eval mode
    h = hidden.reshape(1, H).astype(jnp.float32)
    xh = jnp.concatenate([x, h], axis=1)          # (1, 2H)
    enc = encoder_outputs.astype(jnp.float32)
    args = [xh, enc] + _prep(params)

    vmem = pl.BlockSpec(memory_space=pltpu.MemorySpace.VMEM)
    slab = pl.pallas_call(
        attn_decoder_gru_kernel,
        out_shape=jax.ShapeDtypeStruct((3, H), jnp.float32),
        in_specs=[vmem] * len(args),
        out_specs=vmem,
    )(*args)
    out = slab[0:1, :]
    h_new = slab[1:2, :].reshape(1, 1, H)
    attn_w = slab[2:3, :L]
    # Match PyTorch return shapes: (1,H), (1,1,H), (1,L)
    return out, h_new, attn_w


def reference(inp, hidden, encoder_outputs, params):
    """Pure-JAX reference mirroring the PyTorch forward (eval mode)."""
    p = params
    x = inp.reshape(1, H)
    h = hidden.reshape(1, H)
    cat1 = jnp.concatenate([x, h], axis=1)
    logits = cat1 @ p["W_attn"].T + p["b_attn"]
    attn_w = jax.nn.softmax(logits, axis=1)
    attn_applied = attn_w @ encoder_outputs
    cat2 = jnp.concatenate([x, attn_applied], axis=1)
    g = jax.nn.relu(cat2 @ p["W_comb"].T + p["b_comb"])
    Wih, Whh, bih, bhh = p["W_ih"], p["W_hh"], p["b_ih"], p["b_hh"]
    xr, xz, xn = (g @ Wih[0:H].T + bih[0:H],
                  g @ Wih[H:2 * H].T + bih[H:2 * H],
                  g @ Wih[2 * H:].T + bih[2 * H:])
    hr, hz, hn = (h @ Whh[0:H].T + bhh[0:H],
                  h @ Whh[H:2 * H].T + bhh[H:2 * H],
                  h @ Whh[2 * H:].T + bhh[2 * H:])
    r = jax.nn.sigmoid(xr + hr)
    z = jax.nn.sigmoid(xz + hz)
    n = jnp.tanh(xn + r * hn)
    h_new = (1.0 - z) * n + z * h
    out = h_new @ p["W_out"].T + p["b_out"]
    return out, h_new.reshape(1, 1, H), attn_w


if __name__ == "__main__":
    key = jax.random.PRNGKey(0)
    k_inp, k_hid, k_enc, k_par = jax.random.split(key, 4)
    inp = jax.random.normal(k_inp, (1, 1, H), jnp.float32)
    hidden = jax.random.normal(k_hid, (1, 1, H), jnp.float32)
    encoder_outputs = jax.random.normal(k_enc, (L, H), jnp.float32)
    params = init_params(k_par)

    fwd = jax.jit(attn_decoder_gru)
    out, h_new, attn_w = fwd(inp, hidden, encoder_outputs, params)
    jax.block_until_ready((out, h_new, attn_w))

    out_r, h_r, aw_r = reference(inp, hidden, encoder_outputs, params)
    assert out.shape == (1, H) and h_new.shape == (1, 1, H) and attn_w.shape == (1, L)
    assert jnp.allclose(out, out_r, rtol=1e-4, atol=1e-4)
    assert jnp.allclose(h_new, h_r, rtol=1e-4, atol=1e-4)
    assert jnp.allclose(attn_w, aw_r, rtol=1e-4, atol=1e-4)
    print("KERNEL_OK")
</pallas_src>

<mosaic_0001>
module attributes {stable_mosaic.version = 11 : i64} {
  func.func @attn_decoder_gru_kernel(%arg0: memref<1x64xf32, #tpu.memory_space<vmem>>, %arg1: memref<20x32xf32, #tpu.memory_space<vmem>>, %arg2: memref<64x64xf32, #tpu.memory_space<vmem>>, %arg3: memref<32x32xf32, #tpu.memory_space<vmem>>, %arg4: memref<32x96xf32, #tpu.memory_space<vmem>>, %arg5: memref<32x96xf32, #tpu.memory_space<vmem>>, %arg6: memref<32x32xf32, #tpu.memory_space<vmem>>, %arg7: memref<8x96xf32, #tpu.memory_space<vmem>>, %arg8: memref<3x32xf32, #tpu.memory_space<vmem>>) attributes {dimension_semantics = [], scalar_prefetch = 0 : i64, scratch_operands = 0 : i64, tpu.core_type = #tpu.core_type<tc>} {
    %c0 = arith.constant 0 : index
    %c0_0 = arith.constant 0 : index
    %0 = vector.load %arg0[%c0, %c0_0] : memref<1x64xf32, #tpu.memory_space<vmem>>, vector<1x64xf32>
    %1 = vector.extract_strided_slice %0 {offsets = [0, 32], sizes = [1, 32], strides = [1, 1]} : vector<1x64xf32> to vector<1x32xf32>
    %c0_1 = arith.constant 0 : index
    %c0_2 = arith.constant 0 : index
    %2 = vector.load %arg2[%c0_1, %c0_2] : memref<64x64xf32, #tpu.memory_space<vmem>>, vector<64x64xf32>
    %cst = arith.constant dense<0.000000e+00> : vector<1x64xf32>
    %3 = tpu.matmul %0, %2, %cst {dimension_numbers = #tpu.dot_dimension_numbers<[1], [0], [0], [1], [0, 0, 1, 1], [], []>} : vector<1x64xf32>, vector<64x64xf32>, vector<1x64xf32> -> vector<1x64xf32>
    %4 = vector.extract_strided_slice %3 {offsets = [0, 0], sizes = [1, 20], strides = [1, 1]} : vector<1x64xf32> to vector<1x20xf32>
    %c0_3 = arith.constant 0 : index
    %c0_4 = arith.constant 0 : index
    %5 = vector.load %arg7[%c0_3, %c0_4] : memref<8x96xf32, #tpu.memory_space<vmem>>, vector<1x20xf32>
    %6 = arith.addf %4, %5 : vector<1x20xf32>
    %7 = vector.extract_strided_slice %3 {offsets = [0, 32], sizes = [1, 32], strides = [1, 1]} : vector<1x64xf32> to vector<1x32xf32>
    %cst_5 = arith.constant dense<0xFF800000> : vector<1xf32>
    %8 = vector.multi_reduction <maximumf>, %6, %cst_5 [1] : vector<1x20xf32> to vector<1xf32>
    %9 = vector.shape_cast %8 : vector<1xf32> to vector<1x1xf32>
    %10 = vector.broadcast %9 : vector<1x1xf32> to vector<1x20xf32>
    %11 = arith.subf %6, %10 : vector<1x20xf32>
    %12 = math.exp %11 : vector<1x20xf32>
    %cst_6 = arith.constant dense<0.000000e+00> : vector<1xf32>
    %13 = vector.multi_reduction <add>, %12, %cst_6 [1] : vector<1x20xf32> to vector<1xf32>
    %14 = vector.shape_cast %13 : vector<1xf32> to vector<1x1xf32>
    %15 = vector.broadcast %14 : vector<1x1xf32> to vector<1x20xf32>
    %16 = arith.divf %12, %15 : vector<1x20xf32>
    %c0_7 = arith.constant 0 : index
    %c0_8 = arith.constant 0 : index
    %17 = vector.load %arg1[%c0_7, %c0_8] : memref<20x32xf32, #tpu.memory_space<vmem>>, vector<20x32xf32>
    %cst_9 = arith.constant dense<0.000000e+00> : vector<1x32xf32>
    %18 = tpu.matmul %16, %17, %cst_9 {dimension_numbers = #tpu.dot_dimension_numbers<[1], [0], [0], [1], [0, 0, 1, 1], [], []>} : vector<1x20xf32>, vector<20x32xf32>, vector<1x32xf32> -> vector<1x32xf32>
    %c0_10 = arith.constant 0 : index
    %c0_11 = arith.constant 0 : index
    %19 = vector.load %arg3[%c0_10, %c0_11] : memref<32x32xf32, #tpu.memory_space<vmem>>, vector<32x32xf32>
    %cst_12 = arith.constant dense<0.000000e+00> : vector<1x32xf32>
    %20 = tpu.matmul %18, %19, %cst_12 {dimension_numbers = #tpu.dot_dimension_numbers<[1], [0], [0], [1], [0, 0, 1, 1], [], []>} : vector<1x32xf32>, vector<32x32xf32>, vector<1x32xf32> -> vector<1x32xf32>
    %21 = arith.addf %7, %20 : vector<1x32xf32>
    %c1 = arith.constant 1 : index
    %c0_13 = arith.constant 0 : index
    %22 = vector.load %arg7[%c1, %c0_13] : memref<8x96xf32, #tpu.memory_space<vmem>>, vector<1x32xf32>
    %23 = arith.addf %21, %22 : vector<1x32xf32>
    %cst_14 = arith.constant 0.000000e+00 : f32
    %24 = vector.broadcast %cst_14 : f32 to vector<1x32xf32>
    %25 = arith.maximumf %23, %24 : vector<1x32xf32>
    %c0_15 = arith.constant 0 : index
    %c0_16 = arith.constant 0 : index
    %26 = vector.load %arg4[%c0_15, %c0_16] : memref<32x96xf32, #tpu.memory_space<vmem>>, vector<32x96xf32>
    %cst_17 = arith.constant dense<0.000000e+00> : vector<1x96xf32>
    %27 = tpu.matmul %25, %26, %cst_17 {dimension_numbers = #tpu.dot_dimension_numbers<[1], [0], [0], [1], [0, 0, 1, 1], [], []>} : vector<1x32xf32>, vector<32x96xf32>, vector<1x96xf32> -> vector<1x96xf32>
    %c2 = arith.constant 2 : index
    %c0_18 = arith.constant 0 : index
    %28 = vector.load %arg7[%c2, %c0_18] : memref<8x96xf32, #tpu.memory_space<vmem>>, vector<1x96xf32>
    %29 = arith.addf %27, %28 : vector<1x96xf32>
    %c0_19 = arith.constant 0 : index
    %c0_20 = arith.constant 0 : index
    %30 = vector.load %arg5[%c0_19, %c0_20] : memref<32x96xf32, #tpu.memory_space<vmem>>, vector<32x96xf32>
    %cst_21 = arith.constant dense<0.000000e+00> : vector<1x96xf32>
    %31 = tpu.matmul %1, %30, %cst_21 {dimension_numbers = #tpu.dot_dimension_numbers<[1], [0], [0], [1], [0, 0, 1, 1], [], []>} : vector<1x32xf32>, vector<32x96xf32>, vector<1x96xf32> -> vector<1x96xf32>
    %c3 = arith.constant 3 : index
    %c0_22 = arith.constant 0 : index
    %32 = vector.load %arg7[%c3, %c0_22] : memref<8x96xf32, #tpu.memory_space<vmem>>, vector<1x96xf32>
    %33 = arith.addf %31, %32 : vector<1x96xf32>
    %34 = vector.extract_strided_slice %29 {offsets = [0, 0], sizes = [1, 32], strides = [1, 1]} : vector<1x96xf32> to vector<1x32xf32>
    %35 = vector.extract_strided_slice %33 {offsets = [0, 0], sizes = [1, 32], strides = [1, 1]} : vector<1x96xf32> to vector<1x32xf32>
    %36 = arith.addf %34, %35 : vector<1x32xf32>
    %37 = arith.negf %36 : vector<1x32xf32>
    %38 = math.exp %37 : vector<1x32xf32>
    %cst_23 = arith.constant 1.000000e+00 : f32
    %39 = vector.broadcast %cst_23 : f32 to vector<1x32xf32>
    %40 = arith.addf %39, %38 : vector<1x32xf32>
    %41 = arith.divf %39, %40 : vector<1x32xf32>
    %42 = vector.extract_strided_slice %29 {offsets = [0, 32], sizes = [1, 32], strides = [1, 1]} : vector<1x96xf32> to vector<1x32xf32>
    %43 = vector.extract_strided_slice %33 {offsets = [0, 32], sizes = [1, 32], strides = [1, 1]} : vector<1x96xf32> to vector<1x32xf32>
    %44 = arith.addf %42, %43 : vector<1x32xf32>
    %45 = arith.negf %44 : vector<1x32xf32>
    %46 = math.exp %45 : vector<1x32xf32>
    %cst_24 = arith.constant 1.000000e+00 : f32
    %47 = vector.broadcast %cst_24 : f32 to vector<1x32xf32>
    %48 = arith.addf %47, %46 : vector<1x32xf32>
    %49 = arith.divf %47, %48 : vector<1x32xf32>
    %50 = vector.extract_strided_slice %29 {offsets = [0, 64], sizes = [1, 32], strides = [1, 1]} : vector<1x96xf32> to vector<1x32xf32>
    %51 = vector.extract_strided_slice %33 {offsets = [0, 64], sizes = [1, 32], strides = [1, 1]} : vector<1x96xf32> to vector<1x32xf32>
    %52 = arith.mulf %41, %51 : vector<1x32xf32>
    %53 = arith.addf %50, %52 : vector<1x32xf32>
    %54 = math.tanh %53 : vector<1x32xf32>
    %cst_25 = arith.constant 1.000000e+00 : f32
    %55 = vector.broadcast %cst_25 : f32 to vector<1x32xf32>
    %56 = arith.subf %55, %49 : vector<1x32xf32>
    %57 = arith.mulf %56, %54 : vector<1x32xf32>
    %58 = arith.mulf %49, %1 : vector<1x32xf32>
    %59 = arith.addf %57, %58 : vector<1x32xf32>
    %c0_26 = arith.constant 0 : index
    %c0_27 = arith.constant 0 : index
    %60 = vector.load %arg6[%c0_26, %c0_27] : memref<32x32xf32, #tpu.memory_space<vmem>>, vector<32x32xf32>
    %cst_28 = arith.constant dense<0.000000e+00> : vector<1x32xf32>
    %61 = tpu.matmul %59, %60, %cst_28 {dimension_numbers = #tpu.dot_dimension_numbers<[1], [0], [0], [1], [0, 0, 1, 1], [], []>} : vector<1x32xf32>, vector<32x32xf32>, vector<1x32xf32> -> vector<1x32xf32>
    %c4 = arith.constant 4 : index
    %c0_29 = arith.constant 0 : index
    %62 = vector.load %arg7[%c4, %c0_29] : memref<8x96xf32, #tpu.memory_space<vmem>>, vector<1x32xf32>
    %63 = arith.addf %61, %62 : vector<1x32xf32>
    %c0_30 = arith.constant 0 : index
    %c0_31 = arith.constant 0 : index
    %64 = vector.load %arg8[%c0_30, %c0_31] : memref<3x32xf32, #tpu.memory_space<vmem>>, vector<1x32xf32>
    tpu.vector_store %arg8[%c0_30, %c0_31], %63 {strides = array<i32>} : memref<3x32xf32, #tpu.memory_space<vmem>>, vector<1x32xf32>,
    %c1_32 = arith.constant 1 : index
    %c0_33 = arith.constant 0 : index
    %65 = vector.load %arg8[%c1_32, %c0_33] : memref<3x32xf32, #tpu.memory_space<vmem>>, vector<1x32xf32>
    tpu.vector_store %arg8[%c1_32, %c0_33], %59 {strides = array<i32>} : memref<3x32xf32, #tpu.memory_space<vmem>>, vector<1x32xf32>,
    %c2_34 = arith.constant 2 : index
    %c0_35 = arith.constant 0 : index
    %66 = vector.load %arg8[%c2_34, %c0_35] : memref<3x32xf32, #tpu.memory_space<vmem>>, vector<1x20xf32>
    tpu.vector_store %arg8[%c2_34, %c0_35], %16 {strides = array<i32>} : memref<3x32xf32, #tpu.memory_space<vmem>>, vector<1x20xf32>,
    return
  }
}

</mosaic_0001>

<bundles_post_ra>
// kernel: attn_decoder_gru.1
= control target key start
LH: loop header
LB: loop body
LE: loop exit
PB: predicated region body
PF: predicated region fallthrough
CT: control target
= control target key end

     0   :  { %v743_v0 = vmov 0.0|0.0   ;;  %vm744_vm0 = vmmov 0   ;;  %v745_v4 = vmov 0.0   ;;  %vm38_vm1 = vcmask 523264   ;;  %s748_s11 = smov 64   ;;  %s948_s2 = inlined_call_operand.vmem [shape: f32[64,64], index: 2, kind: input, shape index: {}]   ;;  %s949_s0 = inlined_call_operand.vmem [shape: f32[1,64], index: 0, kind: input, shape index: {}]   ;;  %s950_s7 = inlined_call_operand.vmem [shape: f32[8,96], index: 7, kind: input, shape index: {}]   ;;  %s951_s1 = inlined_call_operand.vmem [shape: f32[20,32], index: 1, kind: input, shape index: {}]   ;;  %s952_s3 = inlined_call_operand.vmem [shape: f32[32,32], index: 3, kind: input, shape index: {}]   ;;  %s953_s8 = inlined_call_operand.vmem [shape: f32[3,32], index: 8, kind: output, shape index: {}]   ;;  %s954_s5 = inlined_call_operand.vmem [shape: f32[32,96], index: 5, kind: input, shape index: {}]   ;;  %s955_s4 = inlined_call_operand.vmem [shape: f32[32,96], index: 4, kind: input, shape index: {}]   ;;  %s956_s6 = inlined_call_operand.vmem [shape: f32[32,32], index: 6, kind: input, shape index: {}]  }
   0x1   :  { %688 = vmatprep.subr.bf16.mxu0 %v743_v0  ;;  %v30_v1 = vld [vmem:[%s948_s2] sm:$0xff]  ;;  %v31_v2 = vld [vmem:[%s948_s2 + $0x8] sm:$0xff]  ;;  %v32_v3 = vld [vmem:[%s948_s2 + $0x10] sm:$0xff]  ;;  %632 = vmatprep.mubr.msk.f32.mxu0 %vm744_vm0, %v745_v4  ;;  %vm114_vm2 = vcmask 155648   ;;  %vm133_vm3 = vcmask 1043456   ;;  %vm129_vm4 = vcmask 162816   ;;  %v382_v40 = vlaneseq }
   0x2   :  { %v689_v5 = vpack.c.bf16 %v31_v2, %v30_v1  ;;  %v33_v6 = vld [vmem:[%s948_s2 + $0x18] sm:$0xff]  ;;  %700 = vmatprep.subr.bf16.mxu1 %v743_v0  ;;  %641 = vmatprep.mubr.msk.f32.mxu1 %vm744_vm0, %v745_v4  ;;  %v34_v8 = vld [vmem:[%s948_s2 + $0x20] sm:$0xff]  ;;  %v35_v9 = vld [vmem:[%s948_s2 + $0x28] sm:$0xff]  ;;  %vm211_vm5 = vcmask 261120   ;;  %vm566_vm6 = vcmask 253952  }
   0x3   :  { %v692_v7 = vpack.c.bf16 %v33_v6, %v32_v3  ;;  %v695_v10 = vpack.c.bf16 %v35_v9, %v34_v8  ;;  %v36_v11 = vld [vmem:[%s948_s2 + $0x30] sm:$0xff]  ;;  %v37_v12 = vld [vmem:[%s948_s2 + $0x38] sm:$0xff]  ;;  %v830_v14 = vld [vmem:[%s949_s0] sm:$0x1]  ;;  %v383_v41 = vshrl.u32 %v382_v40, 7 }
   0x4   :  { %690 = vmatpush3.bf16.msra.mxu0 %v689_v5  ;;  %v698_v13 = vpack.c.bf16 %v37_v12, %v36_v11  ;;  %v112_v15 = vld [vmem:[%s950_s7] sm:$0x1]  ;;  %v127_v26 = vld [vmem:[%s951_s1 + $0x8] sm:$0xff]  ;;  %v128_v28 = vld [vmem:[%s951_s1 + $0x10] sm:$0xf] }
   0x5   :  { %691 = vmatprep.subr.bf16.mxu0 %v743_v0  ;;  %v126_v25 = vld [vmem:[%s951_s1] sm:$0xff]  ;;  %v208_v31 = vld [vmem:[%s952_s3 + $0x8] sm:$0xff]  ;;  %v209_v35 = vld [vmem:[%s952_s3 + $0x10] sm:$0xff]  ;;  %v384_v42 = vsub.s32 0, %v383_v41 }
   0x6   :  { %v701_v27 = vpack.c.bf16 %v127_v26, %v126_v25  ;;  %v207_v30 = vld [vmem:[%s952_s3] sm:$0xff]  ;;  %v210_v36 = vld [vmem:[%s952_s3 + $0x18] sm:$0xff]  ;;  %s746_s3 = smov 96   ;;  %v378_v45 = vld [vmem:[%s954_s5 + $0x8] sm:$0xff] }
   0x7   :  { %v704_v33 = vpack.c.bf16 %v208_v31, %v207_v30  ;;  %v707_v37 = vpack.c.bf16 %v210_v36, %v209_v35  ;;  %v385_v43 = vrot.slane %v830_v14, %v384_v42  ;;  %v377_v44 = vld [vmem:[%s954_s5] sm:$0xff]  ;;  %v379_v46 = vld [vmem:[%s954_s5 + $0x10] sm:$0xff]  ;;  %v380_v48 = vld [vmem:[%s954_s5 + $0x18] sm:$0xff]  ;;  %s747_s5 = smov 32  }
   0x8   :  { %693 = vmatpush3.bf16.msra.mxu0 %v692_v7  ;;  %702 = vmatpush3.bf16.msra.mxu1 %v701_v27  ;;  %v716_v47 = vpack.c.bf16 %v378_v45, %v377_v44  ;;  %v297_v49 = vld [vmem:[%s955_s4] sm:$0xff]  ;;  %v298_v50 = vld [vmem:[%s955_s4 + $0x8] sm:$0xff]  ;;  %v299_v52 = vld [vmem:[%s955_s4 + $0x10] sm:$0xff]  ;;  %v719_v55 = vpack.c.bf16 %v380_v48, %v379_v46 }
   0x9   :  { %694 = vmatprep.subr.bf16.mxu0 %v743_v0  ;;  %639 = vmatprep.subr.mxu1 %v745_v4  ;;  %v710_v51 = vpack.c.bf16 %v298_v50, %v297_v49  ;;  %v300_v53 = vld [vmem:[%s955_s4 + $0x18] sm:$0xff]  ;;  %v290_v57 = vld [vmem:[%s950_s7 + $0x1] sm:$0x1]  ;;  %v381_v2 = vld [vmem:[%s950_s7 + $0x3] sm:$0x1] }
   0xa   :  { %v713_v58 = vpack.c.bf16 %v300_v53, %v299_v52  ;;  %v301_v8 = vld [vmem:[%s950_s7 + $0x2] sm:$0x1]  ;;  %v489_v25 = vld [vmem:[%s956_s6 + $0x18] sm:$0xff] }
   0xc   :  { %696 = vmatpush3.bf16.msra.mxu0 %v695_v10  ;;  %640 = vmatpush3.msk.msra.mxu1 %vm133_vm3, %v128_v28 }
   0xd   :  { %697 = vmatprep.subr.bf16.mxu0 %v743_v0  ;;  %703 = vmatprep.subr.bf16.mxu1 %v743_v0 }
  0x10   :  { %699 = vmatpush3.bf16.msra.mxu0 %v698_v13 }
  0x11   :  { %715 = vmatprep.subr.bf16.mxu0 %v743_v0 }
  0x13   :  { %633 = vmatmul.mubr.msk.f32.vlgmr.msra.gmra.mrb[0].mxu0 %vm38_vm1, %v830_v14 }
  0x14   :  { %674 = vmatprep.mubr.msk.f32.mxu0 %vm744_vm0, %v745_v4  ;;  %717 = vmatpush3.bf16.msra.mxu0 %v716_v47 }
  0x15   :  { %718 = vmatprep.subr.bf16.mxu0 %v743_v0 }
  0x18   :  { %720 = vmatpush3.bf16.msra.mxu0 %v719_v55 }
  0xe6   :  { %v839_v16 = vpop.f32.mrb[0].mxu0 }
  0xe7   :  { %v634_v17 = vpop.f32.mrb[1].mxu0  ;;  %v113_v18 = vadd.f32 %v112_v15, %v839_v16 }
  0xe9   :  { %v115_v19 = vsel %vm114_vm2, %v113_v18, -inf }
  0xea   :  { %116 = vmax.xlane.f32.xlu0 %v115_v19 }
 0x177   :  { %v117_v20 = vpop.xlane.xlu0 %116 }
 0x178   :  { %v118_v21 = vsub.f32 %v113_v18, %v117_v20 }
 0x17a   :  { %v119_v22 = vmul.f32 1.442695, %v118_v21 }
 0x17c   :  { %733 = vpow2.f32 %v119_v22  ;;  %v487_v22 = vld [vmem:[%s956_s6 + $0x8] sm:$0xff] }
 0x186   :  { %v734_v23 = vpop.eup %733 }
 0x187   :  { %v121_v24 = vsel %vm114_vm2, %v734_v23, 0.0 }
 0x188   :  { %122 = vadd.xlane.f32.xlu0 %v121_v24 }
 0x19e   :  { %386 = vrot.lane.b32.xlu0 %v385_v43, %s746_s3 }
 0x215   :  { %v123_v29 = vpop.xlane.xlu0 %122 }
 0x216   :  { %735 = vrcp.f32 %v123_v29 }
 0x219   :  { %v387_v59 = vpop.permute.xlu0 %386 }
 0x21a   :  { %675 = vmatmul.mubr.msk.f32.vlgmr.msra.gmra.mrb[2].mxu0 %vm211_vm5, %v387_v59 }
 0x220   :  { %v736_v32 = vpop.eup %735 }
 0x221   :  { %v125_v34 = vmul.f32 %v736_v32, %v734_v23  ;;  %v488_v23 = vld [vmem:[%s956_s6 + $0x10] sm:$0xff] }
 0x222   :  { %v725_v26 = vpack.c.bf16 %v489_v25, %v488_v23 }
 0x223   :  { %642 = vmatmul.mubr.msk.f32.vlgmr.msra.gmra.mrb[0].mxu1 %vm129_vm4, %v125_v34  ;;  %570 = vst.msk [vmem:[%s953_s8 + $0x2] sm:$0x1] %vm114_vm2, %v125_v34 }
 0x224   :  { %705 = vmatpush3.bf16.msra.mxu1 %v704_v33  ;;  %652 = vmatprep.mubr.msk.f32.mxu1 %vm744_vm0, %v745_v4 }
 0x225   :  { %706 = vmatprep.subr.bf16.mxu1 %v743_v0 }
 0x228   :  { %708 = vmatpush3.bf16.msra.mxu1 %v707_v37 }
 0x229   :  { %709 = vmatprep.subr.bf16.mxu1 %v743_v0 }
 0x2ed   :  { %v456_v3 = vpop.f32.mrb[2].mxu0 }
 0x2ee   :  { %v457_v5 = vadd.f32 %v456_v3, %v381_v2  ;;  %v676_v6 = vpop.f32.mrb[3].mxu0 }
 0x2f6   :  { %v203_v38 = vpop.f32.mrb[0].mxu1 }
 0x2f7   :  { %v643_v39 = vpop.f32.mrb[1].mxu1  ;;  %653 = vmatmul.mubr.msk.f32.vlgmr.msra.gmra.mrb[2].mxu1 %vm211_vm5, %v203_v38 }
 0x2f8   :  { %663 = vmatprep.mubr.msk.f32.mxu1 %vm744_vm0, %v745_v4  ;;  %711 = vmatpush3.bf16.msra.mxu1 %v710_v51 }
 0x2f9   :  { %712 = vmatprep.subr.bf16.mxu1 %v743_v0 }
 0x2fc   :  { %714 = vmatpush3.bf16.msra.mxu1 %v713_v58 }
 0x2fd   :  { %721 = vmatprep.subr.bf16.mxu1 %v743_v0 }
 0x3ca   :  { %v281_v54 = vpop.f32.mrb[2].mxu1 }
 0x3cb   :  { %286 = vrot.lane.b32.xlu1 %v281_v54, %s747_s5  ;;  %v654_v56 = vpop.f32.mrb[3].mxu1 }
 0x3cf   :  { %292 = vrot.lane.b32.xlu1 %v290_v57, %s747_s5 }
 0x43d   :  { %v287_v60 = vpop.permute.xlu1 %286 }
 0x43e   :  { %v289_v61 = vadd.f32 %v287_v60, %v839_v16 }
 0x441   :  { %v293_v62 = vpop.permute.xlu1 %292 }
 0x442   :  { %v295_v63 = vadd.f32 %v293_v62, %v289_v61 }
 0x444   :  { %v296_v1 = vmax.f32 %v295_v63, 0.0 }
 0x446   :  { %303 = vrot.lane.b32.xlu1 %v296_v1, %s746_s3 }
 0x44a   :  { %468 = vrot.lane.b32.xlu1 %v457_v5, %s748_s11 }
 0x4b8   :  { %v304_v7 = vpop.permute.xlu1 %303 }
 0x4b9   :  { %664 = vmatmul.mubr.msk.f32.vlgmr.msra.gmra.mrb[4].mxu1 %vm211_vm5, %v304_v7 }
 0x4ba   :  { %685 = vmatprep.mubr.msk.f32.mxu1 %vm744_vm0, %v745_v4  ;;  %v486_v4 = vld [vmem:[%s956_s6] sm:$0xff] }
 0x4bb   :  { %v722_v24 = vpack.c.bf16 %v487_v22, %v486_v4 }
 0x4bc   :  { %v469_v17 = vpop.permute.xlu1 %468 }
 0x4bd   :  { %723 = vmatpush3.bf16.msra.mxu1 %v722_v24 }
 0x4be   :  { %724 = vmatprep.subr.bf16.mxu1 %v743_v0  ;;  %v490_v0 = vld [vmem:[%s950_s7 + $0x4] sm:$0x1] }
 0x4c1   :  { %726 = vmatpush3.bf16.msra.mxu1 %v725_v26 }
 0x58c   :  { %v373_v9 = vpop.f32.mrb[4].mxu1 }
 0x58d   :  { %v374_v10 = vadd.f32 %v373_v9, %v301_v8  ;;  %v665_v11 = vpop.f32.mrb[5].mxu1 }
 0x58f   :  { %v460_v12 = vadd.f32 %v457_v5, %v374_v10 }
 0x591   :  { %v581_v13 = vmul.f32 -1.442695, %v460_v12 }
 0x593   :  { %737 = vpow2.f32 %v581_v13 }
 0x59d   :  { %v738_v15 = vpop.eup %737 }
 0x59e   :  { %v464_v16 = vadd.f32 1.0, %v738_v15 }
 0x5a0   :  { %739 = vrcp.f32 %v464_v16 }
 0x5aa   :  { %v740_v18 = vpop.eup %739 }
 0x5ab   :  { %v471_v19 = vmul.f32 %v740_v18, %v469_v17  ;;  %v478_v28 = vsub.f32 1.0, %v740_v18  ;;  %v484_v30 = vmul.f32 %v740_v18, %v830_v14 }
 0x5ad   :  { %473 = vrot.lane.b32.xlu1 %v471_v19, %s748_s11 }
 0x61f   :  { %v474_v20 = vpop.permute.xlu1 %473 }
 0x620   :  { %v476_v21 = vadd.f32 %v474_v20, %v374_v10 }
 0x622   :  { %741 = vtanh.f32 %v476_v21 }
 0x62c   :  { %v742_v27 = vpop.eup %741 }
 0x62d   :  { %480 = vrot.lane.b32.xlu1 %v742_v27, %s746_s3 }
 0x69f   :  { %v481_v29 = vpop.permute.xlu1 %480 }
 0x6a0   :  { %v483_v31 = vmul.f32 %v481_v29, %v478_v28 }
 0x6a2   :  { %v485_v32 = vadd.f32 %v484_v30, %v483_v31 }
 0x6a4   :  { %492 = vrot.lane.b32.xlu1 %v485_v32, %s746_s3 }
 0x716   :  { %v493_v33 = vpop.permute.xlu1 %492 }
 0x717   :  { %569 = vst.msk [vmem:[%s953_s8 + $0x1] sm:$0x1] %vm566_vm6, %v493_v33  ;;  %686 = vmatmul.mubr.msk.f32.vlgmr.msra.gmra.mrb[6].mxu1 %vm211_vm5, %v493_v33 }
 0x7ea   :  { %v562_v34 = vpop.f32.mrb[6].mxu1 }
 0x7eb   :  { %v563_v35 = vadd.f32 %v562_v34, %v490_v0  ;;  %v687_v36 = vpop.f32.mrb[7].mxu1 }
 0x7ed   :  { %567 = vst.msk [vmem:[%s953_s8] sm:$0x1] %vm566_vm6, %v563_v35 }

</bundles_post_ra>
